<compile_context>
chip_gen: v5e
topology: v5e:2x2
jax: 0.10.0
libtpu: 0.0.40
codegen_flags: <defaults>
</compile_context>

<pallas_src>
import jax
import jax.numpy as jnp
from jax.experimental import pallas as pl
from jax.experimental.pallas import tpu as pltpu


def _round_up(a, b):
    return (a + b - 1) // b * b


def _sublane(dtype):
    # Sublane packing: 8 rows/vreg for 32-bit types, 16 for bf16, 32 for 8-bit.
    return max(8, 32 // jnp.dtype(dtype).itemsize)


def _auto_block_pairs(R, Cp, Cop, act_bytes, w_bytes, vmem_budget_bytes, sub):
    """Pooled-row tile size (TR) derived from an explicit VMEM budget.

    Per pooled row (covers both pool members, i.e. 2 activation rows):
      double-buffered input block   2 * 2*Cp*act_bytes
      double-buffered output block  2 * Cop*4
      live f32 chain intermediates  ~6 * 2*Cp*4        (x, h, x1, y1, x2/y2, y3)
    Fixed: weights + vec (the pipeline double-buffers them even though they are resident).
    """
    fixed = 2 * ((2 * Cp * Cp + Cp * Cop) * w_bytes + 3 * 3 * Cp * 4)
    per_pair = 2 * 2 * Cp * act_bytes + 2 * Cop * 4 + 6 * 2 * Cp * 4
    cap = (vmem_budget_bytes - fixed) // per_pair
    cap = min(max(cap, sub), 1024)     # >1024 pooled rows/step buys little extra amortization
    cap -= cap % sub

    r_up = _round_up(R, sub)
    if cap >= r_up:
        return r_up                    # whole problem fits in one grid step
    # Prefer a tile that divides R exactly: no padded tail, no extra HBM pass from jnp.pad.
    for tr in range(cap, sub - 1, -sub):
        if R % tr == 0:
            return tr
    return cap


def reduction_block_kernel(x_ref, vec_ref, w1_ref, w2_ref, w3_ref, out_ref):
    """One tile of TR pooling pairs per grid step.

    x_ref:   (2, TR, Cp)  x_ref[0] = even-L member, x_ref[1] = odd-L member (channels-last)
    vec_ref: (3, 3, Cp)   vec[i] = [bn_scale_i, bn_shift_i, conv_bias_i] (zero-padded to Cp)
    w1, w2:  (Cp, Cp)     Conv1d(k=1) weights as (Cin, Cout); bf16 in the production config
    w3:      (Cp, Cop)
    out_ref: (TR, Cop)    pooled output (f32)
    """
    tr = out_ref.shape[0]
    cp = x_ref.shape[-1]
    vec = vec_ref[...]                                   # tiny, f32, VMEM-resident

    # Stack the two pool members along rows: a free reshape (TR is sublane-aligned), so every
    # 1x1 conv below is a single (2*TR, Cp) x (Cp, Cout) MXU call instead of two.
    x = x_ref[...].reshape(2 * tr, cp).astype(jnp.float32)

    def blk(y, i, w_ref):
        # Folded BatchNorm (eval mode) + ReLU in f32 on the VPU.
        h = jnp.maximum(y * vec[i, 0:1] + vec[i, 1:2], 0.0)
        # 1x1 conv == matmul on the MXU; operands in the weight dtype, f32 accumulation.
        acc = jnp.dot(h.astype(w_ref.dtype), w_ref[...],
                      preferred_element_type=jnp.float32)
        return acc + vec[i, 2:3, :w_ref.shape[1]]

    x1 = blk(x, 0, w1_ref)            # cnn1(x)
    y1 = x + x1
    x2 = blk(y1, 1, w2_ref)           # cnn2(x + x1)
    y2 = y1 + x2
    y3 = blk(y2, 2, w3_ref)           # cnn3(x + x1 + x2): (2*TR, Cop)

    # AvgPool1d(2): sublane-aligned row-half average; lane-dense (Cop % 128 == 0) store.
    out_ref[...] = 0.5 * (y3[:tr] + y3[tr:])


def reduction_block(x_nlc, params, *, block_pairs=None,
                    activation_dtype=jnp.float32,
                    vmem_budget_bytes=40 * 1024 * 1024,
                    vmem_limit_bytes=None):
    """x_nlc: (N, L, C) float32.  params = (vec, w1, w2, w3).  Returns (N, L//2, C//2) f32.

    v7x note: the 40 MiB default budget already fits v7x's 64 MiB VMEM -- do not reflexively
    halve the tile; only shrink when C is large enough that the estimate actually overflows.
    For best v7x megacore utilization prefer shapes/budgets that keep grid length >= 2.
    """
    vec, w1, w2, w3 = params
    N, L, C = x_nlc.shape
    Co = w3.shape[1]
    assert L % 2 == 0, "AvgPool1d(2) needs an even sequence length"
    assert w1.shape == (C, C) and w2.shape == (C, C) and w3.shape[0] == C

    Cp = _round_up(C, 128)            # lane-aligned channel count
    Cop = _round_up(Co, 128)          # lane-dense output width (unmasked stores)
    act_bytes = jnp.dtype(activation_dtype).itemsize
    w_bytes = jnp.dtype(w1.dtype).itemsize
    sub = _sublane(activation_dtype)

    R = (N * L) // 2                  # pooled row count
    if block_pairs is None:
        TR = _auto_block_pairs(R, Cp, Cop, act_bytes, w_bytes, vmem_budget_bytes, sub)
    else:
        TR = max(sub, min(_round_up(block_pairs, sub), _round_up(R, sub)))
    R_pad = _round_up(R, TR)
    if vmem_limit_bytes is None:      # always set an explicit scoped-VMEM limit
        vmem_limit_bytes = min(vmem_budget_bytes + (8 << 20), 56 << 20)

    # Zero-pad channels of the (tiny) parameters once; padded channels stay exactly zero
    # through the whole chain, so they never affect real outputs.
    vec_p = jnp.pad(vec, ((0, 0), (0, 0), (0, Cp - C)))
    w1_p = jnp.pad(w1, ((0, Cp - C), (0, Cp - C)))
    w2_p = jnp.pad(w2, ((0, Cp - C), (0, Cp - C)))
    w3_p = jnp.pad(w3, ((0, Cp - C), (0, Cop - Co)))

    # Deinterleave the AvgPool pairs: x_stk[p, r, :] = member p (0=even L, 1=odd L) of pair r.
    x_stk = jnp.transpose(x_nlc.reshape(N, L // 2, 2, C), (2, 0, 1, 3)).reshape(2, R, C)
    x_stk = jnp.pad(x_stk, ((0, 0), (0, R_pad - R), (0, Cp - C)))
    x_stk = x_stk.astype(activation_dtype)   # bf16 here halves HBM activation traffic

    out = pl.pallas_call(
        reduction_block_kernel,
        out_shape=jax.ShapeDtypeStruct((R_pad, Cop), jnp.float32),
        grid=(R_pad // TR,),
        in_specs=[
            pl.BlockSpec((2, TR, Cp), lambda r: (0, r, 0)),
            # Constant index_map -> parameters are fetched once and stay VMEM-resident.
            # TODO(synk): on v7x, pipeline_mode=pl.Buffered(1) on these four specs would drop
            # their (useless) second pipeline buffer and free ~2.5*Cp^2*w_bytes of VMEM.
            pl.BlockSpec(vec_p.shape, lambda r: (0, 0, 0)),
            pl.BlockSpec(w1_p.shape, lambda r: (0, 0)),
            pl.BlockSpec(w2_p.shape, lambda r: (0, 0)),
            pl.BlockSpec(w3_p.shape, lambda r: (0, 0)),
        ],
        out_specs=pl.BlockSpec((TR, Cop), lambda r: (r, 0)),
        compiler_params=pltpu.CompilerParams(
            dimension_semantics=("parallel",),
            vmem_limit_bytes=vmem_limit_bytes),
    )(x_stk, vec_p, w1_p, w2_p, w3_p)

    return out[:R, :Co].reshape(N, L // 2, Co)


def make_params(key, C):
    """Deterministic eval-mode params for the three (BN1d -> ReLU -> Conv1d(k=1)) blocks.

    Returns (vec, w1, w2, w3) in f32:
      vec: (3, 3, C) slab, vec[i] = [bn_scale_i, bn_shift_i, conv_bias_i (zero-padded to C)]
      w* : Conv1d(k=1) weights transposed to (Cin, Cout): (C, C), (C, C), (C, C//2)
    """
    eps = 1e-5
    cout_list = [C, C, C // 2]
    vec_rows, weights = [], []
    for i, Co in enumerate(cout_list):
        ks = jax.random.split(jax.random.fold_in(key, i), 6)
        gamma = 1.0 + 0.1 * jax.random.normal(ks[0], (C,), jnp.float32)
        beta = 0.1 * jax.random.normal(ks[1], (C,), jnp.float32)
        run_mean = 0.1 * jax.random.normal(ks[2], (C,), jnp.float32)
        run_var = jax.random.uniform(ks[3], (C,), jnp.float32, 0.5, 1.5)
        w = (jax.random.normal(ks[4], (Co, C), jnp.float32) / jnp.sqrt(C)).T   # (C, Co)
        b = 0.1 * jax.random.normal(ks[5], (Co,), jnp.float32)
        scale = gamma / jnp.sqrt(run_var + eps)            # fold BN (eval mode)
        shift = beta - run_mean * scale
        vec_rows.append(jnp.stack([scale, shift, jnp.pad(b, (0, C - Co))]))
        weights.append(w)
    return (jnp.stack(vec_rows),) + tuple(weights)


def ref_forward(x_nlc, vec, weights):
    """Pure-JAX reference of the same math (weights may be f32 or bf16)."""
    def blk(y, i, w):
        h = jnp.maximum(y * vec[i, 0] + vec[i, 1], 0.0)
        return (jnp.dot(h.astype(w.dtype), w, preferred_element_type=jnp.float32)
                + vec[i, 2, :w.shape[1]])

    x1 = blk(x_nlc, 0, weights[0])
    y1 = x_nlc + x1
    x2 = blk(y1, 1, weights[1])
    y2 = y1 + x2
    x3 = blk(y2, 2, weights[2])                            # (N, L, C//2)
    N, L, Co = x3.shape
    return x3.reshape(N, L // 2, 2, Co).mean(axis=2)       # AvgPool1d(2)


if __name__ == "__main__":
    key = jax.random.PRNGKey(0)
    kx, kp, kx2, kp2 = jax.random.split(key, 4)

    # --- Small shape, f32 everywhere: tight validation; also exercises the channel-padding
    #     path (C=8 < 128, Co=4 < 128).  PyTorch x layout is (N, C, L).
    N, C, L = 2, 8, 16
    x_ncl = jax.random.normal(kx, (N, C, L), jnp.float32)
    x_nlc = jnp.transpose(x_ncl, (0, 2, 1))                # channels-last (N, L, C)
    vec, w1, w2, w3 = make_params(kp, C)
    out = jax.block_until_ready(reduction_block(x_nlc, (vec, w1, w2, w3)))
    ref = ref_forward(x_nlc, vec, (w1, w2, w3))
    assert out.shape == (N, L // 2, C // 2)
    assert jnp.allclose(out, ref, atol=1e-4, rtol=1e-4), (
        float(jnp.max(jnp.abs(out - ref))))

    # --- Production-like channel count (C multiple of 128: no channel padding path).
    N2, C2, L2 = 2, 256, 32
    x2_ncl = jax.random.normal(kx2, (N2, C2, L2), jnp.float32)
    x2_nlc = jnp.transpose(x2_ncl, (0, 2, 1))
    vec2, u1, u2, u3 = make_params(kp2, C2)

    out2 = jax.block_until_ready(reduction_block(x2_nlc, (vec2, u1, u2, u3)))
    ref2 = ref_forward(x2_nlc, vec2, (u1, u2, u3))
    assert jnp.allclose(out2, ref2, atol=1e-3, rtol=1e-3), (
        float(jnp.max(jnp.abs(out2 - ref2))))

    # --- bf16 production config: bf16 weights AND bf16 activation HBM stream, f32 math/acc.
    wb = tuple(w.astype(jnp.bfloat16) for w in (u1, u2, u3))
    out_bf = jax.block_until_ready(
        reduction_block(x2_nlc, (vec2,) + wb, activation_dtype=jnp.bfloat16))
    xq = x2_nlc.astype(jnp.bfloat16).astype(jnp.float32)   # match the kernel's input quantization
    ref_bf = ref_forward(xq, vec2, wb)
    assert jnp.allclose(out_bf, ref_bf, atol=1e-2, rtol=1e-2), (
        float(jnp.max(jnp.abs(out_bf - ref_bf))))

    print("KERNEL_OK")
</pallas_src>

<mosaic_0001>
module attributes {stable_mosaic.version = 11 : i64} {
  func.func @reduction_block_kernel(%arg0: i32, %arg1: memref<2x16x128xf32, #tpu.memory_space<vmem>>, %arg2: memref<3x3x128xf32, #tpu.memory_space<vmem>>, %arg3: memref<128x128xf32, #tpu.memory_space<vmem>>, %arg4: memref<128x128xf32, #tpu.memory_space<vmem>>, %arg5: memref<128x128xf32, #tpu.memory_space<vmem>>, %arg6: memref<16x128xf32, #tpu.memory_space<vmem>>) attributes {dimension_semantics = [#tpu.dimension_semantics<parallel>], iteration_bounds = array<i64: 1>, scalar_prefetch = 0 : i64, scratch_operands = 0 : i64, tpu.core_type = #tpu.core_type<tc>, window_params = [{transform_indices = @transform_0, window_bounds = array<i64: 2, 16, 128>}, {pipeline_mode = #tpu.pipeline_mode<synchronous>, transform_indices = @transform_1, window_bounds = array<i64: 3, 3, 128>}, {pipeline_mode = #tpu.pipeline_mode<synchronous>, transform_indices = @transform_2, window_bounds = array<i64: 128, 128>}, {pipeline_mode = #tpu.pipeline_mode<synchronous>, transform_indices = @transform_3, window_bounds = array<i64: 128, 128>}, {pipeline_mode = #tpu.pipeline_mode<synchronous>, transform_indices = @transform_4, window_bounds = array<i64: 128, 128>}, {transform_indices = @transform_5, window_bounds = array<i64: 16, 128>}]} {
    %c0 = arith.constant 0 : index
    %c0_0 = arith.constant 0 : index
    %c0_1 = arith.constant 0 : index
    %0 = vector.load %arg2[%c0, %c0_0, %c0_1] : memref<3x3x128xf32, #tpu.memory_space<vmem>>, vector<3x3x128xf32>
    %c0_2 = arith.constant 0 : index
    %c0_3 = arith.constant 0 : index
    %c0_4 = arith.constant 0 : index
    %1 = vector.load %arg1[%c0_2, %c0_3, %c0_4] : memref<2x16x128xf32, #tpu.memory_space<vmem>>, vector<2x16x128xf32>
    %2 = vector.shape_cast %1 : vector<2x16x128xf32> to vector<32x128xf32>
    %3 = vector.extract_strided_slice %0 {offsets = [0, 0, 0], sizes = [1, 1, 128], strides = [1, 1, 1]} : vector<3x3x128xf32> to vector<1x1x128xf32>
    %4 = vector.shape_cast %3 : vector<1x1x128xf32> to vector<1x128xf32>
    %5 = vector.broadcast %4 : vector<1x128xf32> to vector<32x128xf32>
    %6 = arith.mulf %2, %5 : vector<32x128xf32>
    %7 = vector.extract_strided_slice %0 {offsets = [0, 1, 0], sizes = [1, 1, 128], strides = [1, 1, 1]} : vector<3x3x128xf32> to vector<1x1x128xf32>
    %8 = vector.shape_cast %7 : vector<1x1x128xf32> to vector<1x128xf32>
    %9 = vector.broadcast %8 : vector<1x128xf32> to vector<32x128xf32>
    %10 = arith.addf %6, %9 : vector<32x128xf32>
    %cst = arith.constant 0.000000e+00 : f32
    %11 = vector.broadcast %cst : f32 to vector<32x128xf32>
    %12 = arith.maximumf %10, %11 : vector<32x128xf32>
    %c0_5 = arith.constant 0 : index
    %c0_6 = arith.constant 0 : index
    %13 = vector.load %arg3[%c0_5, %c0_6] : memref<128x128xf32, #tpu.memory_space<vmem>>, vector<128x128xf32>
    %cst_7 = arith.constant dense<0.000000e+00> : vector<32x128xf32>
    %14 = tpu.matmul %12, %13, %cst_7 {dimension_numbers = #tpu.dot_dimension_numbers<[1], [0], [0], [1], [0, 0, 1, 1], [], []>} : vector<32x128xf32>, vector<128x128xf32>, vector<32x128xf32> -> vector<32x128xf32>
    %15 = vector.extract_strided_slice %0 {offsets = [0, 2, 0], sizes = [1, 1, 128], strides = [1, 1, 1]} : vector<3x3x128xf32> to vector<1x1x128xf32>
    %16 = vector.shape_cast %15 : vector<1x1x128xf32> to vector<1x128xf32>
    %17 = vector.broadcast %16 : vector<1x128xf32> to vector<32x128xf32>
    %18 = arith.addf %14, %17 : vector<32x128xf32>
    %19 = arith.addf %2, %18 : vector<32x128xf32>
    %20 = vector.extract_strided_slice %0 {offsets = [1, 0, 0], sizes = [1, 1, 128], strides = [1, 1, 1]} : vector<3x3x128xf32> to vector<1x1x128xf32>
    %21 = vector.shape_cast %20 : vector<1x1x128xf32> to vector<1x128xf32>
    %22 = vector.broadcast %21 : vector<1x128xf32> to vector<32x128xf32>
    %23 = arith.mulf %19, %22 : vector<32x128xf32>
    %24 = vector.extract_strided_slice %0 {offsets = [1, 1, 0], sizes = [1, 1, 128], strides = [1, 1, 1]} : vector<3x3x128xf32> to vector<1x1x128xf32>
    %25 = vector.shape_cast %24 : vector<1x1x128xf32> to vector<1x128xf32>
    %26 = vector.broadcast %25 : vector<1x128xf32> to vector<32x128xf32>
    %27 = arith.addf %23, %26 : vector<32x128xf32>
    %cst_8 = arith.constant 0.000000e+00 : f32
    %28 = vector.broadcast %cst_8 : f32 to vector<32x128xf32>
    %29 = arith.maximumf %27, %28 : vector<32x128xf32>
    %c0_9 = arith.constant 0 : index
    %c0_10 = arith.constant 0 : index
    %30 = vector.load %arg4[%c0_9, %c0_10] : memref<128x128xf32, #tpu.memory_space<vmem>>, vector<128x128xf32>
    %cst_11 = arith.constant dense<0.000000e+00> : vector<32x128xf32>
    %31 = tpu.matmul %29, %30, %cst_11 {dimension_numbers = #tpu.dot_dimension_numbers<[1], [0], [0], [1], [0, 0, 1, 1], [], []>} : vector<32x128xf32>, vector<128x128xf32>, vector<32x128xf32> -> vector<32x128xf32>
    %32 = vector.extract_strided_slice %0 {offsets = [1, 2, 0], sizes = [1, 1, 128], strides = [1, 1, 1]} : vector<3x3x128xf32> to vector<1x1x128xf32>
    %33 = vector.shape_cast %32 : vector<1x1x128xf32> to vector<1x128xf32>
    %34 = vector.broadcast %33 : vector<1x128xf32> to vector<32x128xf32>
    %35 = arith.addf %31, %34 : vector<32x128xf32>
    %36 = arith.addf %19, %35 : vector<32x128xf32>
    %37 = vector.extract_strided_slice %0 {offsets = [2, 0, 0], sizes = [1, 1, 128], strides = [1, 1, 1]} : vector<3x3x128xf32> to vector<1x1x128xf32>
    %38 = vector.shape_cast %37 : vector<1x1x128xf32> to vector<1x128xf32>
    %39 = vector.broadcast %38 : vector<1x128xf32> to vector<32x128xf32>
    %40 = arith.mulf %36, %39 : vector<32x128xf32>
    %41 = vector.extract_strided_slice %0 {offsets = [2, 1, 0], sizes = [1, 1, 128], strides = [1, 1, 1]} : vector<3x3x128xf32> to vector<1x1x128xf32>
    %42 = vector.shape_cast %41 : vector<1x1x128xf32> to vector<1x128xf32>
    %43 = vector.broadcast %42 : vector<1x128xf32> to vector<32x128xf32>
    %44 = arith.addf %40, %43 : vector<32x128xf32>
    %cst_12 = arith.constant 0.000000e+00 : f32
    %45 = vector.broadcast %cst_12 : f32 to vector<32x128xf32>
    %46 = arith.maximumf %44, %45 : vector<32x128xf32>
    %c0_13 = arith.constant 0 : index
    %c0_14 = arith.constant 0 : index
    %47 = vector.load %arg5[%c0_13, %c0_14] : memref<128x128xf32, #tpu.memory_space<vmem>>, vector<128x128xf32>
    %cst_15 = arith.constant dense<0.000000e+00> : vector<32x128xf32>
    %48 = tpu.matmul %46, %47, %cst_15 {dimension_numbers = #tpu.dot_dimension_numbers<[1], [0], [0], [1], [0, 0, 1, 1], [], []>} : vector<32x128xf32>, vector<128x128xf32>, vector<32x128xf32> -> vector<32x128xf32>
    %49 = vector.extract_strided_slice %0 {offsets = [2, 2, 0], sizes = [1, 1, 128], strides = [1, 1, 1]} : vector<3x3x128xf32> to vector<1x1x128xf32>
    %50 = vector.shape_cast %49 : vector<1x1x128xf32> to vector<1x128xf32>
    %51 = vector.broadcast %50 : vector<1x128xf32> to vector<32x128xf32>
    %52 = arith.addf %48, %51 : vector<32x128xf32>
    %53 = vector.extract_strided_slice %52 {offsets = [0, 0], sizes = [16, 128], strides = [1, 1]} : vector<32x128xf32> to vector<16x128xf32>
    %54 = vector.extract_strided_slice %52 {offsets = [16, 0], sizes = [16, 128], strides = [1, 1]} : vector<32x128xf32> to vector<16x128xf32>
    %55 = arith.addf %53, %54 : vector<16x128xf32>
    %cst_16 = arith.constant 5.000000e-01 : f32
    %56 = vector.broadcast %cst_16 : f32 to vector<16x128xf32>
    %57 = arith.mulf %56, %55 : vector<16x128xf32>
    %c0_17 = arith.constant 0 : index
    %c0_18 = arith.constant 0 : index
    %58 = vector.load %arg6[%c0_17, %c0_18] : memref<16x128xf32, #tpu.memory_space<vmem>>, vector<16x128xf32>
    tpu.vector_store %arg6[%c0_17, %c0_18], %57 {strides = array<i32>} : memref<16x128xf32, #tpu.memory_space<vmem>>, vector<16x128xf32>,
    return
  }
  func.func @transform_0(%arg0: i32) -> (i32, i32, i32) {
    %c0_i32 = arith.constant 0 : i32
    %c0_i32_0 = arith.constant 0 : i32
    %c0_i32_1 = arith.constant 0 : i32
    return %c0_i32, %arg0, %c0_i32_0 : i32, i32, i32
  }
  func.func @transform_1(%arg0: i32) -> (i32, i32, i32) {
    %c0_i32 = arith.constant 0 : i32
    %c0_i32_0 = arith.constant 0 : i32
    %c0_i32_1 = arith.constant 0 : i32
    %c0_i32_2 = arith.constant 0 : i32
    return %c0_i32, %c0_i32_0, %c0_i32_1 : i32, i32, i32
  }
  func.func @transform_2(%arg0: i32) -> (i32, i32) {
    %c0_i32 = arith.constant 0 : i32
    %c0_i32_0 = arith.constant 0 : i32
    %c0_i32_1 = arith.constant 0 : i32
    return %c0_i32, %c0_i32_0 : i32, i32
  }
  func.func @transform_3(%arg0: i32) -> (i32, i32) {
    %c0_i32 = arith.constant 0 : i32
    %c0_i32_0 = arith.constant 0 : i32
    %c0_i32_1 = arith.constant 0 : i32
    return %c0_i32, %c0_i32_0 : i32, i32
  }
  func.func @transform_4(%arg0: i32) -> (i32, i32) {
    %c0_i32 = arith.constant 0 : i32
    %c0_i32_0 = arith.constant 0 : i32
    %c0_i32_1 = arith.constant 0 : i32
    return %c0_i32, %c0_i32_0 : i32, i32
  }
  func.func @transform_5(%arg0: i32) -> (i32, i32) {
    %c0_i32 = arith.constant 0 : i32
    %c0_i32_0 = arith.constant 0 : i32
    return %arg0, %c0_i32 : i32, i32
  }
}

</mosaic_0001>

<bundles_post_ra>
// kernel: tpu_custom_call.1
= control target key start
LH: loop header
LB: loop body
LE: loop exit
PB: predicated region body
PF: predicated region fallthrough
CT: control target
= control target key end

     0   :  { %10 = vsyncpa [#allocation3], 0  ;;  %s597_s0 = inlined_call_operand.hbm [shape: f32[2,16,128], index: 0, kind: input, shape index: {}]   ;;  %s598_s1 = inlined_call_operand.hbm [shape: f32[3,3,128], index: 1, kind: input, shape index: {}]   ;;  %s599_s2 = inlined_call_operand.hbm [shape: f32[128,128], index: 2, kind: input, shape index: {}]   ;;  %s600_s3 = inlined_call_operand.hbm [shape: f32[128,128], index: 3, kind: input, shape index: {}]   ;;  %s601_s4 = inlined_call_operand.hbm [shape: f32[128,128], index: 4, kind: input, shape index: {}]   ;;  %s602_s5 = inlined_call_operand.hbm [shape: f32[16,128], index: 5, kind: output, shape index: {}]  }
   0x1   :  { %11 = vsyncpa [#allocation6], 0 }
   0x2   :  { %12 = vsyncpa [#allocation9], 0  ;;  %s31_s20 = sshll.u32 %s598_s1, 4  ;;  %s32_s20 = int_to_ptr.hbm [resolvable:$true] %s31_s20 }
   0x3   :  { %13 = vsyncpa [#allocation4], 0  ;;  %s499_s21 = smov [#allocation5]   ;;  %s500_s23 = smov 64  }
   0x4   :  { %s33_s22 = sshll.u32 %s499_s21, 4  ;;  %s501_s24 = smov 4   ;;  %s34_s22 = int_to_ptr.vmem [resolvable:$true] %s33_s22 }
   0x5   :  { %39 = dma.hbm_to_vmem [thread:$0]  %s32_s20, 192, %s34_s22, [#allocation6], %s500_s23, %s500_s23, %s501_s24  }
   0x6   :  { %s57_s27 = sshll.u32 %s600_s3, 4  ;;  %s502_s28 = smov [#allocation8]   ;;  %s58_s27 = int_to_ptr.hbm [resolvable:$true] %s57_s27 }
   0x7   :  { %s59_s29 = sshll.u32 %s502_s28, 4  ;;  %s18_s7 = sshll.u32 %s597_s0, 4  ;;  %s60_s29 = int_to_ptr.vmem [resolvable:$true] %s59_s29  ;;  %s19_s7 = int_to_ptr.hbm [resolvable:$true] %s18_s7 }
   0x8   :  { %s503_s1 = smov 128   ;;  %s504_s8 = smov 8  }
   0x9   :  { %65 = dma.hbm_to_vmem [thread:$0]  %s58_s27, 2048, %s60_s29, [#allocation9], %s503_s1, %s503_s1, %s504_s8  }
   0xa   :  { %s44_s11 = sshll.u32 %s599_s2, 4  ;;  %s505_s3 = smov [#allocation2]   ;;  %s45_s11 = int_to_ptr.hbm [resolvable:$true] %s44_s11 }
   0xb   :  { %s20_s12 = sshll.u32 %s505_s3, 4  ;;  %s506_s0 = smov [#allocation7]   ;;  %s21_s12 = int_to_ptr.vmem [resolvable:$true] %s20_s12 }
   0xc   :  { %26 = dma.hbm_to_vmem [thread:$0]  %s19_s7, 512, %s21_s12, [#allocation3], %s503_s1, %s503_s1, %s504_s8  }
   0xd   :  { %s46_s13 = sshll.u32 %s506_s0, 4  ;;  %s70_s16 = sshll.u32 %s601_s4, 4  ;;  %s47_s13 = int_to_ptr.vmem [resolvable:$true] %s46_s13  ;;  %s71_s16 = int_to_ptr.hbm [resolvable:$true] %s70_s16 }
   0xe   :  { %52 = dma.hbm_to_vmem [thread:$0]  %s45_s11, 2048, %s47_s13, [#allocation6], %s503_s1, %s503_s1, %s504_s8  }
   0xf   :  { %s507_s2 = smov [#allocation10]  }
  0x10   :  { %s72_s17 = sshll.u32 %s507_s2, 4  ;;  %s73_s17 = int_to_ptr.vmem [resolvable:$true] %s72_s17 }
  0x11   :  { %78 = dma.hbm_to_vmem [thread:$0]  %s71_s16, 2048, %s73_s17, [#allocation9], %s503_s1, %s503_s1, %s504_s8  }
  0x12   :  { %491 = dma.done.wait [#allocation3], 512  }
  0x13   :  { %492 = vsyncadd [#allocation3], 4294966784 }
  0x14   :  { %493 = dma.done.wait [#allocation6], 2240  }
  0x15   :  { %494 = vsyncadd [#allocation6], 4294965056 }
  0x16   :  { %495 = dma.done.wait [#allocation9], 4096  }
  0x17   :  { %496 = vsyncadd [#allocation9], 4294963200  ;;  %v135_v0 = vld [vmem:[#allocation7 + $0x78] sm:$0xff]  ;;  %v134_v1 = vld [vmem:[#allocation7 + $0x70] sm:$0xff]  ;;  %s508_s4 = smov [#allocation11]   ;;  %s306_s21 = sshll.u32 %s602_s5, 4  ;;  %s307_s21 = int_to_ptr.hbm [resolvable:$true] %s306_s21 }
  0x18   :  { %137 = vmatpush.msra.mxu0 %v135_v0  ;;  %321 = vmatpush.msra.mxu3 %v135_v0  ;;  %v133_v2 = vld [vmem:[#allocation7 + $0x68] sm:$0xff]  ;;  %v132_v3 = vld [vmem:[#allocation7 + $0x60] sm:$0xff]  ;;  %v131_v4 = vld [vmem:[#allocation7 + $0x58] sm:$0xff]  ;;  %s304_s18 = sshll.u32 %s508_s4, 4  ;;  %s305_s18 = int_to_ptr.vmem [resolvable:$true] %s304_s18 }
  0x19   :  { %v130_v5 = vld [vmem:[#allocation7 + $0x50] sm:$0xff]  ;;  %v129_v6 = vld [vmem:[#allocation7 + $0x48] sm:$0xff]  ;;  %v128_v7 = vld [vmem:[#allocation7 + $0x40] sm:$0xff] }
  0x1a   :  { %138 = vmatpush.msra.mxu0 %v134_v1  ;;  %322 = vmatpush.msra.mxu3 %v134_v1  ;;  %v566_v8 = vld [vmem:[#allocation5] sm:$0x7]  ;;  %v127_v9 = vld [vmem:[#allocation7 + $0x38] sm:$0xff]  ;;  %v125_v16 = vld [vmem:[#allocation7 + $0x28] sm:$0xff] }
  0x1b   :  { %v126_v10 = vld [vmem:[#allocation7 + $0x30] sm:$0xff]  ;;  %v106_v11 = vperm.slane %v566_v8, 0  ;;  %v199_v12 = vld [vmem:[#allocation8 + $0x78] sm:$0xff]  ;;  %v197_v17 = vld [vmem:[#allocation8 + $0x68] sm:$0xff]  ;;  %v111_v20 = vperm.slane %v566_v8, 1  ;;  %v136_v51 = vperm.slane %v566_v8, 2 }
  0x1c   :  { %139 = vmatpush.msra.mxu0 %v133_v2  ;;  %323 = vmatpush.msra.mxu3 %v133_v2  ;;  %v569_v13 = vld [vmem:[#allocation2] sm:$0xff]  ;;  %v571_v14 = vld [vmem:[#allocation2 + $0x8] sm:$0xff]  ;;  %v576_v28 = vld [vmem:[#allocation2 + $0x10] sm:$0xff] }
  0x1d   :  { %v198_v15 = vld [vmem:[#allocation8 + $0x70] sm:$0xff]  ;;  %201 = vmatpush.msra.mxu1 %v199_v12  ;;  %v124_v18 = vld [vmem:[#allocation7 + $0x20] sm:$0xff]  ;;  %v107_v19 = vmul.f32 %v106_v11, %v569_v13  ;;  %v108_v21 = vmul.f32 %v106_v11, %v571_v14  ;;  %v123_v23 = vld [vmem:[#allocation7 + $0x18] sm:$0xff]  ;;  %v109_v35 = vmul.f32 %v106_v11, %v576_v28 }
  0x1e   :  { %140 = vmatpush.msra.mxu0 %v132_v3  ;;  %324 = vmatpush.msra.mxu3 %v132_v3  ;;  %v196_v22 = vld [vmem:[#allocation8 + $0x60] sm:$0xff]  ;;  %v195_v24 = vld [vmem:[#allocation8 + $0x58] sm:$0xff]  ;;  %v122_v25 = vld [vmem:[#allocation7 + $0x10] sm:$0xff] }
  0x1f   :  { %202 = vmatpush.msra.mxu1 %v198_v15  ;;  %v112_v26 = vadd.f32 %v111_v20, %v107_v19  ;;  %v113_v27 = vadd.f32 %v111_v20, %v108_v21  ;;  %v194_v29 = vld [vmem:[#allocation8 + $0x50] sm:$0xff]  ;;  %v121_v30 = vld [vmem:[#allocation7 + $0x8] sm:$0xff]  ;;  %v120_v32 = vld [vmem:[#allocation7] sm:$0xff]  ;;  %v114_v37 = vadd.f32 %v111_v20, %v109_v35 }
  0x20   :  { %141 = vmatpush.msra.mxu0 %v131_v4  ;;  %325 = vmatpush.msra.mxu3 %v131_v4  ;;  %v193_v31 = vld [vmem:[#allocation8 + $0x48] sm:$0xff]  ;;  %v192_v36 = vld [vmem:[#allocation8 + $0x40] sm:$0xff]  ;;  %v191_v38 = vld [vmem:[#allocation8 + $0x38] sm:$0xff] }
  0x21   :  { %203 = vmatpush.msra.mxu1 %v197_v17  ;;  %v116_v33 = vmax.f32 %v112_v26, 0.0  ;;  %v117_v34 = vmax.f32 %v113_v27, 0.0  ;;  %v579_v39 = vld [vmem:[#allocation2 + $0x18] sm:$0xff]  ;;  %v118_v41 = vmax.f32 %v114_v37, 0.0  ;;  %v188_v46 = vld [vmem:[#allocation8 + $0x20] sm:$0xff]  ;;  %v187_v47 = vld [vmem:[#allocation8 + $0x18] sm:$0xff] }
  0x22   :  { %142 = vmatpush.msra.mxu0 %v130_v5  ;;  %326 = vmatpush.msra.mxu3 %v130_v5  ;;  %v190_v40 = vld [vmem:[#allocation8 + $0x30] sm:$0xff]  ;;  %v110_v42 = vmul.f32 %v106_v11, %v579_v39  ;;  %v189_v45 = vld [vmem:[#allocation8 + $0x28] sm:$0xff]  ;;  %v184_v50 = vld [vmem:[#allocation8] sm:$0xff] }
  0x23   :  { %204 = vmatpush.msra.mxu1 %v196_v22  ;;  %v186_v48 = vld [vmem:[#allocation8 + $0x10] sm:$0xff]  ;;  %v185_v49 = vld [vmem:[#allocation8 + $0x8] sm:$0xff]  ;;  %v100_v52 = vld [vmem:[#allocation5 + $0x4] sm:$0x7] }
  0x24   :  { %143 = vmatpush.msra.mxu0 %v129_v6  ;;  %327 = vmatpush.msra.mxu3 %v129_v6  ;;  %v115_v43 = vadd.f32 %v111_v20, %v110_v42  ;;  %v170_v55 = vperm.slane %v100_v52, 0  ;;  %v175_v57 = vperm.slane %v100_v52, 1  ;;  %v263_v58 = vld [vmem:[#allocation10 + $0x78] sm:$0xff]  ;;  %v262_v59 = vld [vmem:[#allocation10 + $0x70] sm:$0xff]  ;;  %v261_v61 = vld [vmem:[#allocation10 + $0x68] sm:$0xff] }
  0x25   :  { %205 = vmatpush.msra.mxu1 %v195_v24  ;;  %265 = vmatpush.msra.mxu2 %v263_v58  ;;  %v260_v1 = vld [vmem:[#allocation10 + $0x60] sm:$0xff]  ;;  %v259_v4 = vld [vmem:[#allocation10 + $0x58] sm:$0xff]  ;;  %v258_v6 = vld [vmem:[#allocation10 + $0x50] sm:$0xff] }
  0x26   :  { %144 = vmatpush.msra.mxu0 %v128_v7  ;;  %328 = vmatpush.msra.mxu3 %v128_v7  ;;  %v119_v44 = vmax.f32 %v115_v43, 0.0  ;;  %v257_v8 = vld [vmem:[#allocation10 + $0x48] sm:$0xff]  ;;  %v256_v12 = vld [vmem:[#allocation10 + $0x40] sm:$0xff]  ;;  %v255_v15 = vld [vmem:[#allocation10 + $0x38] sm:$0xff] }
  0x27   :  { %206 = vmatpush.msra.mxu1 %v194_v29  ;;  %266 = vmatpush.msra.mxu2 %v262_v59  ;;  %v252_v26 = vld [vmem:[#allocation10 + $0x20] sm:$0xff]  ;;  %v251_v27 = vld [vmem:[#allocation10 + $0x18] sm:$0xff]  ;;  %v249_v29 = vld [vmem:[#allocation10 + $0x8] sm:$0xff] }
  0x28   :  { %145 = vmatpush.msra.mxu0 %v127_v9  ;;  %329 = vmatpush.msra.mxu3 %v127_v9 }
  0x29   :  { %207 = vmatpush.msra.mxu1 %v193_v31  ;;  %267 = vmatpush.msra.mxu2 %v261_v61  ;;  %v200_v31 = vperm.slane %v100_v52, 2 }
  0x2a   :  { %146 = vmatpush.msra.mxu0 %v126_v10  ;;  %330 = vmatpush.msra.mxu3 %v126_v10 }
  0x2b   :  { %208 = vmatpush.msra.mxu1 %v192_v36  ;;  %268 = vmatpush.msra.mxu2 %v260_v1 }
  0x2c   :  { %147 = vmatpush.msra.mxu0 %v125_v16  ;;  %331 = vmatpush.msra.mxu3 %v125_v16  ;;  %v254_v16 = vld [vmem:[#allocation10 + $0x30] sm:$0xff] }
  0x2d   :  { %209 = vmatpush.msra.mxu1 %v191_v38  ;;  %269 = vmatpush.msra.mxu2 %v259_v4 }
  0x2e   :  { %148 = vmatpush.msra.mxu0 %v124_v18  ;;  %332 = vmatpush.msra.mxu3 %v124_v18 }
  0x2f   :  { %210 = vmatpush.msra.mxu1 %v190_v40  ;;  %270 = vmatpush.msra.mxu2 %v258_v6 }
  0x30   :  { %149 = vmatpush.msra.mxu0 %v123_v23  ;;  %333 = vmatpush.msra.mxu3 %v123_v23 }
  0x31   :  { %211 = vmatpush.msra.mxu1 %v189_v45  ;;  %271 = vmatpush.msra.mxu2 %v257_v8 }
  0x32   :  { %150 = vmatpush.msra.mxu0 %v122_v25  ;;  %334 = vmatpush.msra.mxu3 %v122_v25  ;;  %v253_v25 = vld [vmem:[#allocation10 + $0x28] sm:$0xff] }
  0x33   :  { %212 = vmatpush.msra.mxu1 %v188_v46  ;;  %272 = vmatpush.msra.mxu2 %v256_v12 }
  0x34   :  { %151 = vmatpush.msra.mxu0 %v121_v30  ;;  %335 = vmatpush.msra.mxu3 %v121_v30  ;;  %v248_v30 = vld [vmem:[#allocation10] sm:$0xff] }
  0x35   :  { %213 = vmatpush.msra.mxu1 %v187_v47  ;;  %273 = vmatpush.msra.mxu2 %v255_v15 }
  0x36   :  { %152 = vmatpush.msra.mxu0 %v120_v32  ;;  %336 = vmatpush.msra.mxu3 %v120_v32  ;;  %v101_v32 = vld [vmem:[#allocation5 + $0x8] sm:$0x7] }
  0x37   :  { %153 = vmatmul.f32.vlgmr.msra.gmra.mxu0 %v116_v33  ;;  %156 = vmatmul.f32.vlgmr.msra.gmra.mxu3 %v117_v34  ;;  %v234_v35 = vperm.slane %v101_v32, 0  ;;  %v239_v37 = vperm.slane %v101_v32, 1  ;;  %v264_v61 = vperm.slane %v101_v32, 2 }
  0x38   :  { %214 = vmatpush.msra.mxu1 %v186_v48  ;;  %274 = vmatpush.msra.mxu2 %v254_v16 }
  0x3a   :  { %215 = vmatpush.msra.mxu1 %v185_v49  ;;  %275 = vmatpush.msra.mxu2 %v253_v25 }
  0x3c   :  { %216 = vmatpush.msra.mxu1 %v184_v50  ;;  %276 = vmatpush.msra.mxu2 %v252_v26 }
  0x3e   :  { %277 = vmatpush.msra.mxu2 %v251_v27 }
  0x3f   :  { %159 = vmatmul.f32.gmra.mxu3 %v118_v41 }
  0x47   :  { %162 = vmatmul.f32.gmra.mxu3 %v119_v44 }
  0xb4   :  { %v154_v53 = vpop.f32.mrf.mxu0 }
  0xb5   :  { %v155_v54 = vadd.f32 %v154_v53, %v136_v51 }
  0xb7   :  { %v584_v56 = vadd.f32 %v155_v54, %v569_v13 }
  0xb9   :  { %v171_v60 = vmul.f32 %v170_v55, %v584_v56 }
  0xba   :  { %v157_v62 = vpop.f32.mrf.mxu3 }
  0xbb   :  { %v158_v63 = vadd.f32 %v157_v62, %v136_v51  ;;  %v176_v0 = vadd.f32 %v175_v57, %v171_v60 }
  0xbd   :  { %v167_v2 = vadd.f32 %v158_v63, %v571_v14  ;;  %v180_v3 = vmax.f32 %v176_v0, 0.0 }
  0xbf   :  { %217 = vmatmul.f32.vlgmr.msra.gmra.mxu1 %v180_v3  ;;  %v172_v5 = vmul.f32 %v170_v55, %v167_v2 }
  0xc1   :  { %v177_v7 = vadd.f32 %v175_v57, %v172_v5 }
  0xc2   :  { %v160_v9 = vpop.f32.mrf.mxu3 }
  0xc3   :  { %v161_v10 = vadd.f32 %v160_v9, %v136_v51  ;;  %v181_v11 = vmax.f32 %v177_v7, 0.0 }
  0xc5   :  { %v168_v13 = vadd.f32 %v161_v10, %v576_v28  ;;  %v250_v28 = vld [vmem:[#allocation10 + $0x10] sm:$0xff] }
  0xc6   :  { %278 = vmatpush.msra.mxu2 %v250_v28 }
  0xc7   :  { %220 = vmatmul.f32.gmra.mxu1 %v181_v11  ;;  %v173_v14 = vmul.f32 %v170_v55, %v168_v13 }
  0xc8   :  { %279 = vmatpush.msra.mxu2 %v249_v29 }
  0xc9   :  { %v178_v17 = vadd.f32 %v175_v57, %v173_v14 }
  0xca   :  { %v163_v18 = vpop.f32.mrf.mxu3  ;;  %280 = vmatpush.msra.mxu2 %v248_v30 }
  0xcb   :  { %v164_v19 = vadd.f32 %v163_v18, %v136_v51  ;;  %v182_v20 = vmax.f32 %v178_v17, 0.0 }
  0xcd   :  { %v169_v21 = vadd.f32 %v164_v19, %v579_v39 }
  0xcf   :  { %223 = vmatmul.f32.gmra.mxu1 %v182_v20  ;;  %v174_v22 = vmul.f32 %v170_v55, %v169_v21 }
  0xd1   :  { %v179_v23 = vadd.f32 %v175_v57, %v174_v22 }
  0xd3   :  { %v183_v24 = vmax.f32 %v179_v23, 0.0 }
  0xd7   :  { %226 = vmatmul.f32.gmra.mxu1 %v183_v24 }
 0x13c   :  { %v218_v33 = vpop.f32.mrf.mxu1 }
 0x13d   :  { %v219_v34 = vadd.f32 %v218_v33, %v200_v31 }
 0x13f   :  { %v230_v36 = vadd.f32 %v219_v34, %v584_v56 }
 0x141   :  { %v235_v38 = vmul.f32 %v234_v35, %v230_v36 }
 0x143   :  { %v240_v39 = vadd.f32 %v239_v37, %v235_v38 }
 0x144   :  { %v221_v40 = vpop.f32.mrf.mxu1 }
 0x145   :  { %v222_v41 = vadd.f32 %v221_v40, %v200_v31  ;;  %v244_v42 = vmax.f32 %v240_v39, 0.0 }
 0x147   :  { %v231_v43 = vadd.f32 %v222_v41, %v167_v2  ;;  %281 = vmatmul.f32.vlgmr.msra.gmra.mxu2 %v244_v42 }
 0x149   :  { %v236_v44 = vmul.f32 %v234_v35, %v231_v43 }
 0x14b   :  { %v241_v45 = vadd.f32 %v239_v37, %v236_v44 }
 0x14c   :  { %v224_v46 = vpop.f32.mrf.mxu1 }
 0x14d   :  { %v225_v47 = vadd.f32 %v224_v46, %v200_v31  ;;  %v245_v48 = vmax.f32 %v241_v45, 0.0 }
 0x14f   :  { %v232_v49 = vadd.f32 %v225_v47, %v168_v13  ;;  %284 = vmatmul.f32.gmra.mxu2 %v245_v48 }
 0x151   :  { %v237_v50 = vmul.f32 %v234_v35, %v232_v49 }
 0x153   :  { %v242_v51 = vadd.f32 %v239_v37, %v237_v50 }
 0x154   :  { %v227_v52 = vpop.f32.mrf.mxu1 }
 0x155   :  { %v228_v53 = vadd.f32 %v227_v52, %v200_v31  ;;  %v246_v54 = vmax.f32 %v242_v51, 0.0 }
 0x157   :  { %v233_v55 = vadd.f32 %v228_v53, %v169_v21  ;;  %287 = vmatmul.f32.gmra.mxu2 %v246_v54 }
 0x159   :  { %v238_v56 = vmul.f32 %v234_v35, %v233_v55 }
 0x15b   :  { %v243_v57 = vadd.f32 %v239_v37, %v238_v56 }
 0x15d   :  { %v247_v58 = vmax.f32 %v243_v57, 0.0 }
 0x15f   :  { %290 = vmatmul.f32.gmra.mxu2 %v247_v58 }
 0x1ca   :  { %v282_v59 = vpop.f32.mrf.mxu2 }
 0x1cb   :  { %v283_v63 = vadd.f32 %v282_v59, %v264_v61 }
 0x1d2   :  { %v285_v60 = vpop.f32.mrf.mxu2 }
 0x1d3   :  { %v286_v4 = vadd.f32 %v285_v60, %v264_v61 }
 0x1da   :  { %v288_v62 = vpop.f32.mrf.mxu2 }
 0x1db   :  { %v289_v0 = vadd.f32 %v288_v62, %v264_v61 }
 0x1dd   :  { %v294_v1 = vadd.f32 %v289_v0, %v283_v63 }
 0x1df   :  { %v296_v2 = vmul.f32 0.5, %v294_v1 }
 0x1e1   :  { %298 = vst [vmem:[#allocation11] sm:$0xff] %v296_v2 }
 0x1e2   :  { %v291_v3 = vpop.f32.mrf.mxu2 }
 0x1e3   :  { %v292_v5 = vadd.f32 %v291_v3, %v264_v61 }
 0x1e5   :  { %v295_v6 = vadd.f32 %v292_v5, %v286_v4 }
 0x1e7   :  { %v297_v7 = vmul.f32 0.5, %v295_v6 }
 0x1e9   :  { %299 = vst [vmem:[#allocation11 + $0x8] sm:$0xff] %v297_v7 }
 0x1ea   :  { %312 = dma.vmem_to_hbm [thread:$0]  %s305_s18, 256, %s307_s21, [#allocation4], %s503_s1, %s503_s1, %s504_s8  }
 0x1eb   :  { %497 = dma.done.wait [#allocation4], 256  }
 0x1ec   :  { %498 = vsyncadd [#allocation4], 4294967040 }
 0x1ed   :  { %317 = vsyncpa [#allocation3], 1 }
 0x1ee   :  { %318 = vsyncpa [#allocation6], 1 }
 0x1ef   :  { %319 = vsyncpa [#allocation9], 1 }
 0x1f0   :  { %320 = vsyncpa [#allocation4], 1 }

</bundles_post_ra>
